<compile_context>
chip_gen: v6e
topology: v6e:2x2x1
jax: 0.10.0
libtpu: 0.0.40
codegen_flags: <defaults>
</compile_context>

<pallas_src>
import jax
import jax.numpy as jnp
from jax.experimental import pallas as pl
from jax.experimental.pallas import tpu as pltpu


def _mask_apply_kernel(w_ref, x_ref, out_ref):
    """out = where(w != 0, x, 0); w is (TR, 1) so the select lane-broadcasts over H."""
    out_ref[...] = jnp.where(w_ref[...] != 0, x_ref[...], 0)


def _vmem_capacity_bytes():
    """Physical VMEM of the current generation (fallback: v7x's 64 MiB)."""
    try:
        info = pltpu.get_tpu_info()
        cap = getattr(info, "vmem_capacity_bytes", None)
        if cap:
            return int(cap)
    except Exception:
        pass
    return 64 << 20


def _choose_tile_rows(rows, H, itemsize, vmem_limit_bytes):
    """Byte-targeted row tile: ~4-8 MiB feature blocks, >=4 grid steps, mult of 8."""
    # Keep (2 input + 2 output) buffers of this block well under the scoped limit.
    target_bytes = min(8 << 20, vmem_limit_bytes // 8)
    tr = max(1, target_bytes // max(1, H * itemsize))
    # Guarantee >= 4 grid steps so v7x's two TensorCores both get work.
    tr = min(tr, max(1, rows // 4))
    tr = max(8, (tr // 8) * 8)
    return min(tr, rows)


def abstract_ner_tagger_mask_apply(word_seqs, inp_tensor, *,
                                   block_rows=None, donate_features=False):
    """Fused make_mask + apply_mask.

    Args:
      word_seqs:  (B, S) integer token ids (0 == padding).
      inp_tensor: (B, S, H) features (float32 or bfloat16).
      block_rows: optional explicit row-tile size over the flattened (B*S)
        axis (multiple of 8).  Default: sized by bytes per generation.
      donate_features: alias the feature buffer to the masked output.  For the
        HBM allocation to actually be saved, the caller must also donate the
        feature argument into the surrounding jit (donate_argnums).

    Returns:
      (mask, masked): mask is (B, S) float32, masked is (B, S, H) in
      inp_tensor's dtype.
    """
    B, S = word_seqs.shape
    Bx, Sx, H = inp_tensor.shape
    assert (B, S) == (Bx, Sx), "word_seqs and inp_tensor must agree on (B, S)"
    feat_dtype = inp_tensor.dtype
    itemsize = jnp.dtype(feat_dtype).itemsize

    rows = B * S
    w2 = word_seqs.reshape(rows, 1).astype(jnp.int32)   # token ids on sublanes
    x2 = inp_tensor.reshape(rows, H)                     # free leading-dim merge

    # Per-generation VMEM budget: half of physical, capped at 64 MiB
    # (v7x: 32 MiB of 64; v5e/v6e: 64 MiB of 128 — also lifts v5e's 16 MiB default).
    vmem_limit = min(_vmem_capacity_bytes() // 2, 64 << 20)

    if block_rows is not None:
        tr = int(block_rows)
    else:
        tr = _choose_tile_rows(rows, H, itemsize, vmem_limit)

    if tr >= rows:
        tr = rows                      # single full block: block dims == array dims
    else:
        assert tr % 8 == 0, "row tile must be a multiple of 8"
    grid = (pl.cdiv(rows, tr),)        # partial final block handled by Pallas
                                       # (masked writeback), no pad / slice needed.

    # TODO(synk): if H is not a multiple of 128 (e.g. 300-d embeddings), pad the
    # feature dim once upstream so (tr, H) output blocks stay lane-dense.

    extra_kwargs = {}
    if donate_features:
        extra_kwargs["input_output_aliases"] = {1: 0}   # x2 -> masked output

    masked2 = pl.pallas_call(
        _mask_apply_kernel,
        out_shape=jax.ShapeDtypeStruct((rows, H), feat_dtype),
        grid=grid,
        in_specs=[
            # (TR, 1) word-id block: sublane axis = rows, size-1 lane axis.
            pl.BlockSpec((tr, 1), lambda i: (i, 0)),
            # Feature block; default double-buffering keeps the DMA engine
            # saturated for a pure streaming kernel.
            pl.BlockSpec((tr, H), lambda i: (i, 0)),
        ],
        out_specs=pl.BlockSpec((tr, H), lambda i: (i, 0)),
        compiler_params=pltpu.CompilerParams(
            # All row tiles are independent -> shard across v7x's 2 TCs.
            dimension_semantics=("parallel",),
            vmem_limit_bytes=int(vmem_limit),
        ),
        **extra_kwargs,
    )(w2, x2)

    masked = masked2.reshape(B, S, H)

    # The (B, S) float mask itself: a negligible XLA compare+cast (1/H of the
    # feature traffic) matching torch's make_mask exactly.
    mask = (word_seqs != 0).astype(jnp.float32)
    return mask, masked


def _reference(word_seqs, inp_tensor):
    """Pure-JAX reference mirroring the PyTorch make_mask/apply_mask."""
    mask = (word_seqs != 0).astype(jnp.float32)
    masked = (inp_tensor.astype(jnp.float32) * mask[..., None]).astype(inp_tensor.dtype)
    return mask, masked


if __name__ == "__main__":
    # TODO(synk): forward() is abstract in this base class; act_layer (gelu)
    # and criterion (nll) are only used by concrete subclasses, so they are
    # not run here.
    key = jax.random.PRNGKey(0)
    k_ids, k_feat = jax.random.split(key)

    # Small shapes consistent with the module: (batch, seq, hidden).
    B, S, H = 2, 8, 32
    word_seqs = jax.random.randint(k_ids, (B, S), minval=0, maxval=3).astype(jnp.int32)
    inp_tensor = jax.random.normal(k_feat, (B, S, H), dtype=jnp.float32)

    ref_mask, ref_masked = _reference(word_seqs, inp_tensor)

    # 1) Default path (byte-sized tiles, grid of >= 2 steps for this shape).
    mask, masked = abstract_ner_tagger_mask_apply(word_seqs, inp_tensor)
    jax.block_until_ready((mask, masked))
    assert mask.shape == (B, S) and mask.dtype == jnp.float32
    assert masked.shape == (B, S, H) and masked.dtype == jnp.float32
    assert jnp.array_equal(mask, ref_mask), "mask mismatch vs reference"
    assert jnp.allclose(masked, ref_masked), "apply_mask mismatch vs reference"

    # 2) Explicit row-tile (block_rows=8 -> grid=(2,)).
    mask2, masked2 = abstract_ner_tagger_mask_apply(word_seqs, inp_tensor,
                                                    block_rows=8)
    jax.block_until_ready((mask2, masked2))
    assert jnp.allclose(masked2, ref_masked), "tiled apply_mask mismatch"

    # 3) Partial-final-block path (rows=15 not a multiple of 8, no padding
    #    pass) + bf16 features + donated feature buffer.
    B3, S3 = 3, 5
    w3 = jax.random.randint(k_ids, (B3, S3), minval=0, maxval=3).astype(jnp.int32)
    x3 = jax.random.normal(k_feat, (B3, S3, H), dtype=jnp.bfloat16)
    m3, o3 = abstract_ner_tagger_mask_apply(w3, x3, block_rows=8,
                                            donate_features=True)
    jax.block_until_ready((m3, o3))
    rm3, ro3 = _reference(w3, x3)
    assert o3.dtype == jnp.bfloat16 and o3.shape == (B3, S3, H)
    assert jnp.array_equal(m3, rm3), "bf16/partial-block mask mismatch"
    assert jnp.array_equal(o3.astype(jnp.float32), ro3.astype(jnp.float32)), \
        "bf16/partial-block apply_mask mismatch"

    print("KERNEL_OK")
</pallas_src>

<mosaic_0001>
module attributes {stable_mosaic.version = 11 : i64} {
  func.func @_mask_apply_kernel(%arg0: i32, %arg1: memref<8x1xi32, #tpu.memory_space<vmem>>, %arg2: memref<8x32xf32, #tpu.memory_space<vmem>>, %arg3: memref<8x32xf32, #tpu.memory_space<vmem>>) attributes {dimension_semantics = [#tpu.dimension_semantics<parallel>], iteration_bounds = array<i64: 2>, scalar_prefetch = 0 : i64, scratch_operands = 0 : i64, tpu.core_type = #tpu.core_type<tc>, window_params = [{transform_indices = @transform_0, window_bounds = array<i64: 8, 1>}, {transform_indices = @transform_1, window_bounds = array<i64: 8, 32>}, {transform_indices = @transform_2, window_bounds = array<i64: 8, 32>}]} {
    %c0 = arith.constant 0 : index
    %c0_0 = arith.constant 0 : index
    %0 = vector.load %arg1[%c0, %c0_0] : memref<8x1xi32, #tpu.memory_space<vmem>>, vector<8x1xi32>
    %c0_i32 = arith.constant 0 : i32
    %1 = vector.broadcast %c0_i32 : i32 to vector<8x1xi32>
    %2 = arith.cmpi ne, %0, %1 : vector<8x1xi32>
    %c0_1 = arith.constant 0 : index
    %c0_2 = arith.constant 0 : index
    %3 = vector.load %arg2[%c0_1, %c0_2] : memref<8x32xf32, #tpu.memory_space<vmem>>, vector<8x32xf32>
    %c0_i32_3 = arith.constant 0 : i32
    %4 = arith.sitofp %c0_i32_3 : i32 to f32
    %5 = vector.shape_cast %2 : vector<8x1xi1> to vector<8x1xi1>
    %6 = vector.broadcast %5 : vector<8x1xi1> to vector<8x32xi1>
    %7 = vector.broadcast %4 : f32 to vector<8x32xf32>
    %8 = arith.select %6, %3, %7 : vector<8x32xi1>, vector<8x32xf32>
    %c0_4 = arith.constant 0 : index
    %c0_5 = arith.constant 0 : index
    %9 = vector.load %arg3[%c0_4, %c0_5] : memref<8x32xf32, #tpu.memory_space<vmem>>, vector<8x32xf32>
    tpu.vector_store %arg3[%c0_4, %c0_5], %8 {strides = array<i32>} : memref<8x32xf32, #tpu.memory_space<vmem>>, vector<8x32xf32>,
    return
  }
  func.func @transform_0(%arg0: i32) -> (i32, i32) {
    %c0_i32 = arith.constant 0 : i32
    %c0_i32_0 = arith.constant 0 : i32
    return %arg0, %c0_i32 : i32, i32
  }
  func.func @transform_1(%arg0: i32) -> (i32, i32) {
    %c0_i32 = arith.constant 0 : i32
    %c0_i32_0 = arith.constant 0 : i32
    return %arg0, %c0_i32 : i32, i32
  }
  func.func @transform_2(%arg0: i32) -> (i32, i32) {
    %c0_i32 = arith.constant 0 : i32
    %c0_i32_0 = arith.constant 0 : i32
    return %arg0, %c0_i32 : i32, i32
  }
}

</mosaic_0001>

<bundles_post_ra>
// kernel: tpu_custom_call.1
= control target key start
LH: loop header
LB: loop body
LE: loop exit
PB: predicated region body
PF: predicated region fallthrough
CT: control target
= control target key end

     0   :  { %7 = vsyncpa [#allocation3], 0  ;;  %s479_s0 = inlined_call_operand.vmem [shape: s32[16,1], index: 0, kind: input, shape index: {}]   ;;  %s480_s1 = inlined_call_operand.vmem [shape: f32[16,32], index: 1, kind: input, shape index: {}]   ;;  %s481_s2 = inlined_call_operand.hbm [shape: f32[16,32], index: 2, kind: output, shape index: {}]  }
   0x1   :  { %9 = vsyncpa [#allocation3 + $0x1], 0  ;;  %s383_s9 = smov 0   ;;  %s385_s10 = smov 0  }
   0x2   :  { %s387_s11 = smov 0   ;;  %s389_s12 = smov 0  }
   0x3 LB: > { %s404_s13 = sadd.s32 4294967295, %s364_s12   ;;  %s252_s14 = sadd.s32 4294967294, %s364_s12   ;;  %s364_s12 = sphi %s389_s12, %s487_s12   ;;  %s360_s11 = sphi %s387_s11, %s486_s11   ;;  %s356_s10 = sphi %s385_s10, %s485_s10   ;;  %s352_s9 = sphi %s383_s9, %s484_s9  }
   0x4   : > { %s408_s15 = sadd.s32 1, %s364_s12   ;;  %s74_s16 = sadd.s32 1, %s360_s11 }
   0x5   : > { %s71_s17 = ssub.s32 %s364_s12, %s408_s15  ;;  %p84_p0 = scmp.ne.s32.totalorder %s360_s11, %s356_s10 }
   0x6   : > { %p72_p1 = scmp.eq.s32.totalorder %s71_s17, 0  ;;  %p85_p2 = scmp.eq.s32.totalorder %s404_s13, 1 }
   0x7   : > { %p90_p3 = scmp.ne.s32.totalorder %s356_s10, %s352_s9  ;;  %p91_p4 = scmp.eq.s32.totalorder %s252_s14, 1 }
   0x8   : > { %s419_s18 = scalar_select %p72_p1, %s360_s11, %s74_s16  }
   0x9   : > { %p421_p5 = por %p85_p2, %p84_p0  ;;  %p425_p6 = por %p91_p4, %p90_p3 }
   0xa   : > { %p255_p7 = scmp.ge.s32.totalorder %s364_s12, 1  ;;  %p123_p8 = scmp.lt.s32.totalorder %s364_s12, 3 }
   0xc   : > { %p124_p9 = pnand %p255_p7, %p123_p8 }
   0xd   : > { %p148_p10 = scmp.lt.s32.totalorder (!%p124_p9), %s404_s13, 1  ;;  %s145_s26 = sand.u32 (!%p124_p9), 1, %s356_s10  }
   0xe   : > { %127 = sbr.rel (%p124_p9) target bundleno = 165 (0xa5), region = 28  ;;  %s256_s27 = sshll.u32 (!%p124_p9), %s145_s26, 3 }
   0xf   : > { %s260_s3 = sshll.u32 (!%p124_p9), %s404_s13, 7  ;;  %s147_s4 = scalar_lea.vmem (!%p124_p9), [#allocation2], %s256_s27 }
  0x10   : > { %s181_s5 = sshll.u32 (!%p124_p9), %s147_s4, 4  ;;  %s444_s8 = scalar_lea.hbm (!%p124_p9), %s481_s2, %s260_s3  ;;  %s182_s5 = int_to_ptr.vmem [resolvable:$true] %s181_s5 }
  0x11   : > { %s168_s14 = scalar_lea.sflag (!%p124_p9), [#allocation3], %s145_s26  ;;  %s304_s16 = scalar_lea.vmem (!%p124_p9), %s182_s5, 128 }
  0x12   : > { %p305_p11 = scmp.ne.s32.totalorder (!%p124_p9), %s182_s5, %s304_s16 }
  0x13   : > { %v366_v0 = vmov 0   ;;  %s149_s21 = scalar_select %p148_p10, %s404_s13, 1  ;;  %vm165_vm1 = vcmask 261120  }
  0x14   : > { %303 = vset.pattern.permute.xlu0 %v366_v0  ;;  %p306_p12 = pnand %p305_p11, %p421_p5  ;;  %s367_s13 = smov [#allocation2]  }
  0x15   : > { %s257_s22 = sshll.u32 %s149_s21, 3  ;;  %s308_s17 = sshll.u32 %s367_s13, 4  ;;  %s309_s17 = int_to_ptr.vmem [resolvable:$false] %s308_s17 }
  0x16   : > { %s151_s25 = scalar_lea.vmem %s479_s0, %s257_s22  ;;  %s155_s30 = scalar_lea.vmem %s480_s1, %s257_s22 }
  0x17   : > { %v156_v1 = vld [vmem:[%s151_s25] sm:$0xff]  ;;  %p307_p13 = pneg %p306_p12  ;;  %s310_s21 = scalar_lea.vmem %s309_s17, 256 }
  0x18   : > { %vm157_vm0 = vcmp.ne.s32.totalorder %v156_v1, 0  ;;  %v158_v3 = vld [vmem:[%s155_s30] sm:$0xff]  ;;  %p311_p0 = scmp.lt.s32.totalorder %s182_s5, %s309_s17  ;;  %p312_p1 = scmp.lt.s32.totalorder %s310_s21, %s304_s16 }
  0x19   : > { %v159_v2 = vsel %vm157_vm0, 1, %v366_v0 }
  0x1a   : > { %161 = vperm.xlu0 %303, %v159_v2   ;;  %p313_p2 = por %p312_p1, %p311_p0 }
  0x1c   : > { %p314_p3 = pnand %p313_p2, %p307_p13 }
  0x95   : > { %v162_v4 = vpop.permute.xlu0 %161 }
  0x96   : > { %vm163_vm2 = vcmp.eq.s32.totalorder %v162_v4, 1 }
  0x97   : > { %v164_v5 = vsel %vm163_vm2, %v158_v3, 0.0 }
  0x98   : > { %166 = vst.msk [vmem:[%s147_s4] sm:$0xff] %vm165_vm1, %v164_v5 }
  0x99   : > { %317 = shalt.err (!%p314_p3)
}
  0x9a   : > { %s318_s22 = scalar_lea.hbm %s444_s8, 128  ;;  %s322_s25 = scalar_lea.hbm %s481_s2, 256 }
  0x9b   : > { %p319_p4 = scmp.ne.s32.totalorder %s444_s8, %s318_s22  ;;  %p323_p9 = scmp.lt.s32.totalorder %s444_s8, %s481_s2 }
  0x9c   : > { %p324_p10 = scmp.lt.s32.totalorder %s322_s25, %s318_s22 }
  0x9d   : > { %p320_p7 = pnand %p319_p4, %p421_p5 }
  0x9e   : > { %p325_p11 = por %p324_p10, %p323_p9 }
  0x9f   : > { %p321_p8 = pneg %p320_p7 }
  0xa1   : > { %p326_p12 = pnand %p325_p11, %p321_p8 }
  0xa3   : > { %329 = shalt.err (!%p326_p12)
}
  0xa4   : > { %263 = dma.vmem_to_hbm [thread:$0]  (%p421_p5), %s182_s5, 128, %s444_s8, %s168_s14  }
  0xa5 PF: > { %p269_p13 = scmp.ge.s32.totalorder %s364_s12, 2  ;;  %s193_s28 = sand.u32 1, %s352_s9  }
  0xa6   : > { %s194_s29 = scalar_lea.sflag [#allocation3], %s193_s28 }
  0xa7   : > { %p266_p0 = pnand %p269_p13, %p425_p6 }
  0xa9   : > { %p267_p1 = pneg %p266_p0 }
  0xab   : > { %347 = dma.done.wait (%p267_p1), %s194_s29, 128  }
  0xac   : > { %349 = vsyncadd (%p267_p1), %s194_s29, 4294967168  ;;  %p12_p2 = scmp.ge.s32.totalorder %s408_s15, 4   ;;  %s484_s9 = smov %s356_s10 }
  0xad   : > { %s485_s10 = smov %s360_s11  ;;  %s486_s11 = smov %s419_s18 }
  0xae   : > { %s487_s12 = smov %s408_s15  ;;  %14 = sbr.rel (!%p12_p2) target bundleno = 3 (0x3), region = 66 }
  0xb3   :  { %199 = vsyncpa [#allocation3], 1 }
  0xb4   :  { %201 = vsyncpa [#allocation3 + $0x1], 1 }

</bundles_post_ra>
